<compile_context>
chip_gen: v7x
topology: tpu7x:2x2x1
jax: 0.10.0
libtpu: 0.0.40
codegen_flags: <defaults>
</compile_context>

<pallas_src>
import jax
import jax.numpy as jnp
from jax.experimental import pallas as pl
from jax.experimental.pallas import tpu as pltpu

D_IN, D_HID, D_OUT = 42, 100, 3
PAD = 128            # lane-aligned feature width for the hidden matmuls


def _cdiv(a, b):
    return (a + b - 1) // b


def _round_up(n, m):
    return _cdiv(n, m) * m


def mlp_kernel(x_ref,
               w1_ref, b1_ref,
               w2_ref, b2_ref,
               w3_ref, b3_ref,
               w4_ref, b4_ref,
               w5_ref, b5_ref,
               o_ref,
               xpad_ref):
    """One batch tile: 5 fused matmuls (bf16 MXU, f32 accum) + f32 bias/ReLU."""
    compute_dtype = jnp.bfloat16

    # Zero-extend the 42 real feature lanes to 128 inside VMEM so the first
    # matmul is an aligned 128x128 MXU op while HBM only streams 42 bf16 cols.
    xpad_ref[...] = jnp.zeros_like(xpad_ref)
    xpad_ref[:, :D_IN] = x_ref[...]
    h = xpad_ref[...]                                # (b_tile, 128) bf16

    layers = ((w1_ref, b1_ref, True),
              (w2_ref, b2_ref, True),
              (w3_ref, b3_ref, True),
              (w4_ref, b4_ref, True),
              (w5_ref, b5_ref, False))
    out = None
    for w_ref, b_ref, relu in layers:
        acc = jnp.dot(h, w_ref[...], preferred_element_type=jnp.float32)
        acc = acc + b_ref[...]                       # (1,128) f32 bias broadcast
        if relu:
            h = jnp.maximum(acc, 0.0).astype(compute_dtype)
        else:
            out = acc

    # Only 3 of 128 columns are real: narrow masked store, ~42x less HBM
    # writeback than a 128-wide f32 slab.
    o_ref[...] = out[:, :D_OUT].astype(o_ref.dtype)


def mlp_forward(x, padded_params, *, tile_b=1024):
    """x: (B, 42) float32; padded_params: list of (W_pad bf16 (128,128), b_pad f32 (1,128))."""
    B, d_in = x.shape
    assert d_in == D_IN

    # Pick the tile so batch-padding waste stays tiny (< num_tiles*8 rows).
    num_tiles = max(1, _cdiv(B, tile_b))
    b_tile = _round_up(_cdiv(B, num_tiles), 8)       # >=8 sublanes
    b_pad = num_tiles * b_tile

    # Single fused pad+cast: batch rows padded, lanes kept at 42, bf16 in HBM.
    x_p = jnp.zeros((b_pad, D_IN), jnp.bfloat16).at[:B].set(x.astype(jnp.bfloat16))

    flat = [a for wb in padded_params for a in wb]

    in_specs = [pl.BlockSpec((b_tile, D_IN), lambda i: (i, 0))]      # batch-tiled x
    for p in flat:
        in_specs.append(pl.BlockSpec(p.shape, lambda i: (0, 0)))     # resident weights/biases
    out_spec = pl.BlockSpec((b_tile, D_OUT), lambda i: (i, 0))

    weight_bytes = sum(int(p.size) * p.dtype.itemsize for p in flat)
    cost = pl.CostEstimate(
        flops=2 * b_pad * PAD * PAD * 5,
        transcendentals=0,
        bytes_accessed=b_pad * D_IN * 2 + b_pad * D_OUT * 4 + weight_bytes)

    out = pl.pallas_call(
        mlp_kernel,
        grid=(num_tiles,),
        in_specs=in_specs,
        out_specs=out_spec,
        out_shape=jax.ShapeDtypeStruct((b_pad, D_OUT), jnp.float32),
        scratch_shapes=[pltpu.VMEM((b_tile, PAD), jnp.bfloat16)],
        compiler_params=pltpu.CompilerParams(
            dimension_semantics=("parallel",)),
        cost_estimate=cost,
    )(x_p, *flat)

    return out[:B]                                   # (B, 3) f32


def init_params(key):
    """Deterministic init matching nn.Linear (stored as (in, out)), in f32."""
    dims = [(D_IN, D_HID), (D_HID, D_HID), (D_HID, D_HID), (D_HID, D_HID), (D_HID, D_OUT)]
    params = []
    for i, (d_in, d_out) in enumerate(dims):
        kw, kb = jax.random.split(jax.random.fold_in(key, i))
        bound = 1.0 / (d_in ** 0.5)       # PyTorch default uniform(-1/sqrt(in), 1/sqrt(in))
        w = jax.random.uniform(kw, (d_in, d_out), jnp.float32, -bound, bound)
        b = jax.random.uniform(kb, (1, d_out), jnp.float32, -bound, bound)
        params.append((w, b))
    return params


def pad_params(params):
    """Zero-pad every (W, b) to (128,128)/(1,128); weights cast to bf16 for the MXU."""
    padded = []
    for w, b in params:
        d_in, d_out = w.shape
        w_p = jnp.zeros((PAD, PAD), jnp.float32).at[:d_in, :d_out].set(w)
        b_p = jnp.zeros((1, PAD), jnp.float32).at[:, :d_out].set(b)
        padded.append((w_p.astype(jnp.bfloat16), b_p))
    return padded


def mlp_reference(x, params, compute_dtype=jnp.float32):
    """Plain-JAX reference; compute_dtype emulates the kernel's bf16 matmul inputs."""
    h = x
    for i, (w, b) in enumerate(params):
        h = jnp.dot(h.astype(compute_dtype), w.astype(compute_dtype),
                    preferred_element_type=jnp.float32) + b
        if i < len(params) - 1:
            h = jnp.maximum(h, 0.0)
    return h


if __name__ == "__main__":
    key = jax.random.PRNGKey(0)
    k_x, k_p = jax.random.split(key)

    B = 8
    x = jax.random.normal(k_x, (B, D_IN), jnp.float32)
    params = init_params(k_p)
    padded_params = pad_params(params)

    out = mlp_forward(x, padded_params)
    out = jax.block_until_ready(out)

    # Reference with the same bf16 matmul inputs / f32 accumulation as the kernel.
    ref = mlp_reference(x, params, compute_dtype=jnp.bfloat16)

    assert out.shape == (B, D_OUT), out.shape
    assert jnp.allclose(out, ref, atol=1e-2, rtol=1e-2), "mismatch vs reference"

    print("KERNEL_OK")
</pallas_src>

<mosaic_0001>
module attributes {stable_mosaic.version = 11 : i64} {
  func.func @mlp_kernel(%arg0: i32, %arg1: memref<8x42xbf16, #tpu.memory_space<vmem>>, %arg2: memref<128x128xbf16, #tpu.memory_space<vmem>>, %arg3: memref<1x128xf32, #tpu.memory_space<vmem>>, %arg4: memref<128x128xbf16, #tpu.memory_space<vmem>>, %arg5: memref<1x128xf32, #tpu.memory_space<vmem>>, %arg6: memref<128x128xbf16, #tpu.memory_space<vmem>>, %arg7: memref<1x128xf32, #tpu.memory_space<vmem>>, %arg8: memref<128x128xbf16, #tpu.memory_space<vmem>>, %arg9: memref<1x128xf32, #tpu.memory_space<vmem>>, %arg10: memref<128x128xbf16, #tpu.memory_space<vmem>>, %arg11: memref<1x128xf32, #tpu.memory_space<vmem>>, %arg12: memref<8x3xf32, #tpu.memory_space<vmem>>, %arg13: memref<8x128xbf16, #tpu.memory_space<vmem>>) attributes {dimension_semantics = [#tpu.dimension_semantics<parallel>], iteration_bounds = array<i64: 1>, scalar_prefetch = 0 : i64, scratch_operands = 1 : i64, tpu.core_type = #tpu.core_type<tc>, window_params = [{transform_indices = @transform_0, window_bounds = array<i64: 8, 42>}, {pipeline_mode = #tpu.pipeline_mode<synchronous>, transform_indices = @transform_1, window_bounds = array<i64: 128, 128>}, {pipeline_mode = #tpu.pipeline_mode<synchronous>, transform_indices = @transform_2, window_bounds = array<i64: 1, 128>}, {pipeline_mode = #tpu.pipeline_mode<synchronous>, transform_indices = @transform_3, window_bounds = array<i64: 128, 128>}, {pipeline_mode = #tpu.pipeline_mode<synchronous>, transform_indices = @transform_4, window_bounds = array<i64: 1, 128>}, {pipeline_mode = #tpu.pipeline_mode<synchronous>, transform_indices = @transform_5, window_bounds = array<i64: 128, 128>}, {pipeline_mode = #tpu.pipeline_mode<synchronous>, transform_indices = @transform_6, window_bounds = array<i64: 1, 128>}, {pipeline_mode = #tpu.pipeline_mode<synchronous>, transform_indices = @transform_7, window_bounds = array<i64: 128, 128>}, {pipeline_mode = #tpu.pipeline_mode<synchronous>, transform_indices = @transform_8, window_bounds = array<i64: 1, 128>}, {pipeline_mode = #tpu.pipeline_mode<synchronous>, transform_indices = @transform_9, window_bounds = array<i64: 128, 128>}, {pipeline_mode = #tpu.pipeline_mode<synchronous>, transform_indices = @transform_10, window_bounds = array<i64: 1, 128>}, {transform_indices = @transform_11, window_bounds = array<i64: 8, 3>}]} {
    %cst = arith.constant 0.000000e+00 : bf16
    %0 = vector.broadcast %cst : bf16 to vector<8x128xbf16>
    %c0 = arith.constant 0 : index
    %c0_0 = arith.constant 0 : index
    %1 = vector.load %arg13[%c0, %c0_0] : memref<8x128xbf16, #tpu.memory_space<vmem>>, vector<8x128xbf16>
    tpu.vector_store %arg13[%c0, %c0_0], %0 {strides = array<i32>} : memref<8x128xbf16, #tpu.memory_space<vmem>>, vector<8x128xbf16>,
    %c0_1 = arith.constant 0 : index
    %c0_2 = arith.constant 0 : index
    %2 = vector.load %arg1[%c0_1, %c0_2] : memref<8x42xbf16, #tpu.memory_space<vmem>>, vector<8x42xbf16>
    %c0_3 = arith.constant 0 : index
    %c0_4 = arith.constant 0 : index
    %3 = vector.load %arg13[%c0_3, %c0_4] : memref<8x128xbf16, #tpu.memory_space<vmem>>, vector<8x42xbf16>
    tpu.vector_store %arg13[%c0_3, %c0_4], %2 {strides = array<i32>} : memref<8x128xbf16, #tpu.memory_space<vmem>>, vector<8x42xbf16>,
    %c0_5 = arith.constant 0 : index
    %c0_6 = arith.constant 0 : index
    %4 = vector.load %arg13[%c0_5, %c0_6] : memref<8x128xbf16, #tpu.memory_space<vmem>>, vector<8x128xbf16>
    %c0_7 = arith.constant 0 : index
    %c0_8 = arith.constant 0 : index
    %5 = vector.load %arg2[%c0_7, %c0_8] : memref<128x128xbf16, #tpu.memory_space<vmem>>, vector<128x128xbf16>
    %cst_9 = arith.constant dense<0.000000e+00> : vector<8x128xf32>
    %6 = tpu.matmul %4, %5, %cst_9 {dimension_numbers = #tpu.dot_dimension_numbers<[1], [0], [0], [1], [0, 0, 1, 1], [], []>} : vector<8x128xbf16>, vector<128x128xbf16>, vector<8x128xf32> -> vector<8x128xf32>
    %c0_10 = arith.constant 0 : index
    %c0_11 = arith.constant 0 : index
    %7 = vector.load %arg3[%c0_10, %c0_11] : memref<1x128xf32, #tpu.memory_space<vmem>>, vector<1x128xf32>
    %8 = vector.broadcast %7 : vector<1x128xf32> to vector<8x128xf32>
    %9 = arith.addf %6, %8 : vector<8x128xf32>
    %cst_12 = arith.constant 0.000000e+00 : f32
    %10 = vector.broadcast %cst_12 : f32 to vector<8x128xf32>
    %11 = arith.maximumf %9, %10 : vector<8x128xf32>
    %12 = arith.truncf %11 : vector<8x128xf32> to vector<8x128xbf16>
    %c0_13 = arith.constant 0 : index
    %c0_14 = arith.constant 0 : index
    %13 = vector.load %arg4[%c0_13, %c0_14] : memref<128x128xbf16, #tpu.memory_space<vmem>>, vector<128x128xbf16>
    %cst_15 = arith.constant dense<0.000000e+00> : vector<8x128xf32>
    %14 = tpu.matmul %12, %13, %cst_15 {dimension_numbers = #tpu.dot_dimension_numbers<[1], [0], [0], [1], [0, 0, 1, 1], [], []>} : vector<8x128xbf16>, vector<128x128xbf16>, vector<8x128xf32> -> vector<8x128xf32>
    %c0_16 = arith.constant 0 : index
    %c0_17 = arith.constant 0 : index
    %15 = vector.load %arg5[%c0_16, %c0_17] : memref<1x128xf32, #tpu.memory_space<vmem>>, vector<1x128xf32>
    %16 = vector.broadcast %15 : vector<1x128xf32> to vector<8x128xf32>
    %17 = arith.addf %14, %16 : vector<8x128xf32>
    %cst_18 = arith.constant 0.000000e+00 : f32
    %18 = vector.broadcast %cst_18 : f32 to vector<8x128xf32>
    %19 = arith.maximumf %17, %18 : vector<8x128xf32>
    %20 = arith.truncf %19 : vector<8x128xf32> to vector<8x128xbf16>
    %c0_19 = arith.constant 0 : index
    %c0_20 = arith.constant 0 : index
    %21 = vector.load %arg6[%c0_19, %c0_20] : memref<128x128xbf16, #tpu.memory_space<vmem>>, vector<128x128xbf16>
    %cst_21 = arith.constant dense<0.000000e+00> : vector<8x128xf32>
    %22 = tpu.matmul %20, %21, %cst_21 {dimension_numbers = #tpu.dot_dimension_numbers<[1], [0], [0], [1], [0, 0, 1, 1], [], []>} : vector<8x128xbf16>, vector<128x128xbf16>, vector<8x128xf32> -> vector<8x128xf32>
    %c0_22 = arith.constant 0 : index
    %c0_23 = arith.constant 0 : index
    %23 = vector.load %arg7[%c0_22, %c0_23] : memref<1x128xf32, #tpu.memory_space<vmem>>, vector<1x128xf32>
    %24 = vector.broadcast %23 : vector<1x128xf32> to vector<8x128xf32>
    %25 = arith.addf %22, %24 : vector<8x128xf32>
    %cst_24 = arith.constant 0.000000e+00 : f32
    %26 = vector.broadcast %cst_24 : f32 to vector<8x128xf32>
    %27 = arith.maximumf %25, %26 : vector<8x128xf32>
    %28 = arith.truncf %27 : vector<8x128xf32> to vector<8x128xbf16>
    %c0_25 = arith.constant 0 : index
    %c0_26 = arith.constant 0 : index
    %29 = vector.load %arg8[%c0_25, %c0_26] : memref<128x128xbf16, #tpu.memory_space<vmem>>, vector<128x128xbf16>
    %cst_27 = arith.constant dense<0.000000e+00> : vector<8x128xf32>
    %30 = tpu.matmul %28, %29, %cst_27 {dimension_numbers = #tpu.dot_dimension_numbers<[1], [0], [0], [1], [0, 0, 1, 1], [], []>} : vector<8x128xbf16>, vector<128x128xbf16>, vector<8x128xf32> -> vector<8x128xf32>
    %c0_28 = arith.constant 0 : index
    %c0_29 = arith.constant 0 : index
    %31 = vector.load %arg9[%c0_28, %c0_29] : memref<1x128xf32, #tpu.memory_space<vmem>>, vector<1x128xf32>
    %32 = vector.broadcast %31 : vector<1x128xf32> to vector<8x128xf32>
    %33 = arith.addf %30, %32 : vector<8x128xf32>
    %cst_30 = arith.constant 0.000000e+00 : f32
    %34 = vector.broadcast %cst_30 : f32 to vector<8x128xf32>
    %35 = arith.maximumf %33, %34 : vector<8x128xf32>
    %36 = arith.truncf %35 : vector<8x128xf32> to vector<8x128xbf16>
    %c0_31 = arith.constant 0 : index
    %c0_32 = arith.constant 0 : index
    %37 = vector.load %arg10[%c0_31, %c0_32] : memref<128x128xbf16, #tpu.memory_space<vmem>>, vector<128x128xbf16>
    %cst_33 = arith.constant dense<0.000000e+00> : vector<8x128xf32>
    %38 = tpu.matmul %36, %37, %cst_33 {dimension_numbers = #tpu.dot_dimension_numbers<[1], [0], [0], [1], [0, 0, 1, 1], [], []>} : vector<8x128xbf16>, vector<128x128xbf16>, vector<8x128xf32> -> vector<8x128xf32>
    %c0_34 = arith.constant 0 : index
    %c0_35 = arith.constant 0 : index
    %39 = vector.load %arg11[%c0_34, %c0_35] : memref<1x128xf32, #tpu.memory_space<vmem>>, vector<1x128xf32>
    %40 = vector.broadcast %39 : vector<1x128xf32> to vector<8x128xf32>
    %41 = arith.addf %38, %40 : vector<8x128xf32>
    %42 = vector.extract_strided_slice %41 {offsets = [0, 0], sizes = [8, 3], strides = [1, 1]} : vector<8x128xf32> to vector<8x3xf32>
    %c0_36 = arith.constant 0 : index
    %c0_37 = arith.constant 0 : index
    %43 = vector.load %arg12[%c0_36, %c0_37] : memref<8x3xf32, #tpu.memory_space<vmem>>, vector<8x3xf32>
    tpu.vector_store %arg12[%c0_36, %c0_37], %42 {strides = array<i32>} : memref<8x3xf32, #tpu.memory_space<vmem>>, vector<8x3xf32>,
    return
  }
  func.func @transform_0(%arg0: i32) -> (i32, i32) {
    %c0_i32 = arith.constant 0 : i32
    %c0_i32_0 = arith.constant 0 : i32
    return %arg0, %c0_i32 : i32, i32
  }
  func.func @transform_1(%arg0: i32) -> (i32, i32) {
    %c0_i32 = arith.constant 0 : i32
    %c0_i32_0 = arith.constant 0 : i32
    %c0_i32_1 = arith.constant 0 : i32
    return %c0_i32, %c0_i32_0 : i32, i32
  }
  func.func @transform_2(%arg0: i32) -> (i32, i32) {
    %c0_i32 = arith.constant 0 : i32
    %c0_i32_0 = arith.constant 0 : i32
    %c0_i32_1 = arith.constant 0 : i32
    return %c0_i32, %c0_i32_0 : i32, i32
  }
  func.func @transform_3(%arg0: i32) -> (i32, i32) {
    %c0_i32 = arith.constant 0 : i32
    %c0_i32_0 = arith.constant 0 : i32
    %c0_i32_1 = arith.constant 0 : i32
    return %c0_i32, %c0_i32_0 : i32, i32
  }
  func.func @transform_4(%arg0: i32) -> (i32, i32) {
    %c0_i32 = arith.constant 0 : i32
    %c0_i32_0 = arith.constant 0 : i32
    %c0_i32_1 = arith.constant 0 : i32
    return %c0_i32, %c0_i32_0 : i32, i32
  }
  func.func @transform_5(%arg0: i32) -> (i32, i32) {
    %c0_i32 = arith.constant 0 : i32
    %c0_i32_0 = arith.constant 0 : i32
    %c0_i32_1 = arith.constant 0 : i32
    return %c0_i32, %c0_i32_0 : i32, i32
  }
  func.func @transform_6(%arg0: i32) -> (i32, i32) {
    %c0_i32 = arith.constant 0 : i32
    %c0_i32_0 = arith.constant 0 : i32
    %c0_i32_1 = arith.constant 0 : i32
    return %c0_i32, %c0_i32_0 : i32, i32
  }
  func.func @transform_7(%arg0: i32) -> (i32, i32) {
    %c0_i32 = arith.constant 0 : i32
    %c0_i32_0 = arith.constant 0 : i32
    %c0_i32_1 = arith.constant 0 : i32
    return %c0_i32, %c0_i32_0 : i32, i32
  }
  func.func @transform_8(%arg0: i32) -> (i32, i32) {
    %c0_i32 = arith.constant 0 : i32
    %c0_i32_0 = arith.constant 0 : i32
    %c0_i32_1 = arith.constant 0 : i32
    return %c0_i32, %c0_i32_0 : i32, i32
  }
  func.func @transform_9(%arg0: i32) -> (i32, i32) {
    %c0_i32 = arith.constant 0 : i32
    %c0_i32_0 = arith.constant 0 : i32
    %c0_i32_1 = arith.constant 0 : i32
    return %c0_i32, %c0_i32_0 : i32, i32
  }
  func.func @transform_10(%arg0: i32) -> (i32, i32) {
    %c0_i32 = arith.constant 0 : i32
    %c0_i32_0 = arith.constant 0 : i32
    %c0_i32_1 = arith.constant 0 : i32
    return %c0_i32, %c0_i32_0 : i32, i32
  }
  func.func @transform_11(%arg0: i32) -> (i32, i32) {
    %c0_i32 = arith.constant 0 : i32
    %c0_i32_0 = arith.constant 0 : i32
    return %arg0, %c0_i32 : i32, i32
  }
}

</mosaic_0001>

<bundles_post_ra>
// kernel: tpu_custom_call.1
= control target key start
LH: loop header
LB: loop body
LE: loop exit
PB: predicated region body
PF: predicated region fallthrough
CT: control target
= control target key end

     0   :  { %16 = vsyncpa [#allocation4], 0  ;;  %s1304_s0 = inlined_call_operand.hbm [shape: bf16[8,42], index: 0, kind: input, shape index: {}]   ;;  %s1305_s1 = inlined_call_operand.hbm [shape: bf16[128,128], index: 1, kind: input, shape index: {}]   ;;  %s1306_s2 = inlined_call_operand.vmem [shape: f32[1,128], index: 2, kind: input, shape index: {}]   ;;  %s1307_s3 = inlined_call_operand.hbm [shape: bf16[128,128], index: 3, kind: input, shape index: {}]   ;;  %s1308_s4 = inlined_call_operand.vmem [shape: f32[1,128], index: 4, kind: input, shape index: {}]   ;;  %s1309_s5 = inlined_call_operand.hbm [shape: bf16[128,128], index: 5, kind: input, shape index: {}]   ;;  %s1310_s6 = inlined_call_operand.vmem [shape: f32[1,128], index: 6, kind: input, shape index: {}]   ;;  %s1311_s7 = inlined_call_operand.hbm [shape: bf16[128,128], index: 7, kind: input, shape index: {}]   ;;  %s1312_s8 = inlined_call_operand.vmem [shape: f32[1,128], index: 8, kind: input, shape index: {}]   ;;  %s1313_s9 = inlined_call_operand.hbm [shape: bf16[128,128], index: 9, kind: input, shape index: {}]   ;;  %s1314_s10 = inlined_call_operand.vmem [shape: f32[1,128], index: 10, kind: input, shape index: {}]   ;;  %s1315_s11 = inlined_call_operand.vmem [shape: f32[8,3], index: 11, kind: output, shape index: {}]  }
   0x1   :  { %17 = vsyncpa [#allocation6], 0 }
   0x2   :  { %18 = vsyncpa [#allocation9], 0 }
   0x3   :  { %19 = vsyncpa [#allocation12], 0  ;;  %s1078_s17 = smov [#allocation5]   ;;  %s938_s21 = scalar_lea.hbm %s1305_s1, 1024 }
   0x4   :  { %s35_s18 = sshll.u32 %s1078_s17, 4  ;;  %p939_p0 = scmp.ne.s32.totalorder %s1305_s1, %s938_s21  ;;  %s36_s18 = int_to_ptr.vmem [resolvable:$true] %s35_s18 }
   0x5   :  { %p942_p1 = scmp.lt.u32.totalorder %s938_s21, %s1305_s1 }
   0x7   :  { %p944_p2 = pnand %p942_p1, %p939_p0 }
   0x9   :  { %947 = shalt.err (!%p944_p2)
}
   0xa   :  { %s948_s26 = scalar_lea.vmem %s36_s18, 1024  ;;  %p953_p4 = scmp.lt.s32.totalorder %s36_s18, %s36_s18 }
   0xb   :  { %p949_p3 = scmp.ne.s32.totalorder %s36_s18, %s948_s26  ;;  %p954_p5 = scmp.lt.s32.totalorder %s948_s26, %s948_s26 }
   0xd   :  { %p955_p6 = por %p954_p5, %p953_p4 }
   0xf   :  { %p956_p7 = pnand %p955_p6, %p949_p3 }
  0x11   :  { %959 = shalt.err (!%p956_p7)
}
  0x12   :  { %s1079_s27 = smov 64   ;;  %s1080_s28 = smov 4  }
  0x13   :  { %41 = dma.hbm_to_vmem [thread:$0]  %s1305_s1, 1024, %s36_s18, [#allocation6], %s1079_s27, %s1079_s27, %s1080_s28  }
  0x14   :  { %s1081_s12 = smov [#allocation8]   ;;  %s1082_s14 = smov [#allocation3]  }
  0x15   :  { %s63_s13 = sshll.u32 %s1081_s12, 4  ;;  %s26_s15 = sshll.u32 %s1082_s14, 4  ;;  %s64_s13 = int_to_ptr.vmem [resolvable:$true] %s63_s13  ;;  %s27_s15 = int_to_ptr.vmem [resolvable:$true] %s26_s15 }
  0x16   :  { %s960_s19 = scalar_lea.hbm %s1309_s5, 1024 }
  0x17   :  { %p961_p8 = scmp.ne.s32.totalorder %s1309_s5, %s960_s19  ;;  %p964_p9 = scmp.lt.u32.totalorder %s960_s19, %s1309_s5 }
  0x19   :  { %p966_p10 = pnand %p964_p9, %p961_p8 }
  0x1b   :  { %969 = shalt.err (!%p966_p10)
}
  0x1c   :  { %s970_s1 = scalar_lea.vmem %s64_s13, 1024  ;;  %p975_p12 = scmp.lt.s32.totalorder %s64_s13, %s64_s13 }
  0x1d   :  { %p971_p11 = scmp.ne.s32.totalorder %s64_s13, %s970_s1  ;;  %p976_p13 = scmp.lt.s32.totalorder %s970_s1, %s970_s1 }
  0x1f   :  { %p977_p0 = por %p976_p13, %p975_p12 }
  0x21   :  { %p978_p1 = pnand %p977_p0, %p971_p11 }
  0x23   :  { %981 = shalt.err (!%p978_p1)
}
  0x24   :  { %69 = dma.hbm_to_vmem [thread:$0]  %s1309_s5, 1024, %s64_s13, [#allocation9], %s1079_s27, %s1079_s27, %s1080_s28  }
  0x25   :  { %s982_s29 = scalar_lea.hbm %s1304_s0, 64 }
  0x26   :  { %p983_p2 = scmp.ne.s32.totalorder %s1304_s0, %s982_s29  ;;  %p986_p3 = scmp.lt.u32.totalorder %s982_s29, %s1304_s0 }
  0x28   :  { %p988_p4 = pnand %p986_p3, %p983_p2 }
  0x2a   :  { %991 = shalt.err (!%p988_p4)
}
  0x2b   :  { %s992_s17 = scalar_lea.vmem %s27_s15, 64  ;;  %p997_p6 = scmp.lt.s32.totalorder %s27_s15, %s27_s15 }
  0x2c   :  { %p993_p5 = scmp.ne.s32.totalorder %s27_s15, %s992_s17  ;;  %p998_p7 = scmp.lt.s32.totalorder %s992_s17, %s992_s17 }
  0x2e   :  { %p999_p8 = por %p998_p7, %p997_p6 }
  0x30   :  { %p1000_p9 = pnand %p999_p8, %p993_p5 }
  0x32   :  { %1003 = shalt.err (!%p1000_p9)
}
  0x33   :  { %29 = dma.hbm_to_vmem [thread:$0]  %s1304_s0, 64, %s27_s15, [#allocation4]  }
  0x34   :  { %s1083_s19 = smov [#allocation7]   ;;  %s1084_s21 = smov [#allocation10]  }
  0x35   :  { %s49_s20 = sshll.u32 %s1083_s19, 4  ;;  %s77_s22 = sshll.u32 %s1084_s21, 4  ;;  %s50_s20 = int_to_ptr.vmem [resolvable:$true] %s49_s20  ;;  %s78_s22 = int_to_ptr.vmem [resolvable:$true] %s77_s22 }
  0x36   :  { %s1004_s18 = scalar_lea.hbm %s1307_s3, 1024 }
  0x37   :  { %p1005_p10 = scmp.ne.s32.totalorder %s1307_s3, %s1004_s18  ;;  %p1008_p11 = scmp.lt.u32.totalorder %s1004_s18, %s1307_s3 }
  0x39   :  { %p1010_p12 = pnand %p1008_p11, %p1005_p10 }
  0x3b   :  { %1013 = shalt.err (!%p1010_p12)
}
  0x3c   :  { %s1014_s0 = scalar_lea.vmem %s50_s20, 1024  ;;  %p1019_p0 = scmp.lt.s32.totalorder %s50_s20, %s50_s20 }
  0x3d   :  { %p1015_p13 = scmp.ne.s32.totalorder %s50_s20, %s1014_s0  ;;  %p1020_p1 = scmp.lt.s32.totalorder %s1014_s0, %s1014_s0 }
  0x3f   :  { %p1021_p2 = por %p1020_p1, %p1019_p0 }
  0x41   :  { %p1022_p3 = pnand %p1021_p2, %p1015_p13 }
  0x43   :  { %1025 = shalt.err (!%p1022_p3)
}
  0x44   :  { %55 = dma.hbm_to_vmem [thread:$0]  %s1307_s3, 1024, %s50_s20, [#allocation6], %s1079_s27, %s1079_s27, %s1080_s28  }
  0x45   :  { %s1026_s16 = scalar_lea.hbm %s1311_s7, 1024 }
  0x46   :  { %p1027_p4 = scmp.ne.s32.totalorder %s1311_s7, %s1026_s16  ;;  %p1030_p5 = scmp.lt.u32.totalorder %s1026_s16, %s1311_s7 }
  0x48   :  { %p1032_p6 = pnand %p1030_p5, %p1027_p4 }
  0x4a   :  { %1035 = shalt.err (!%p1032_p6)
}
  0x4b   :  { %s1036_s21 = scalar_lea.vmem %s78_s22, 1024  ;;  %p1041_p8 = scmp.lt.s32.totalorder %s78_s22, %s78_s22 }
  0x4c   :  { %p1037_p7 = scmp.ne.s32.totalorder %s78_s22, %s1036_s21  ;;  %p1042_p9 = scmp.lt.s32.totalorder %s1036_s21, %s1036_s21 }
  0x4e   :  { %p1043_p10 = por %p1042_p9, %p1041_p8 }
  0x50   :  { %p1044_p11 = pnand %p1043_p10, %p1037_p7 }
  0x52   :  { %1047 = shalt.err (!%p1044_p11)
}
  0x53   :  { %83 = dma.hbm_to_vmem [thread:$0]  %s1311_s7, 1024, %s78_s22, [#allocation9], %s1079_s27, %s1079_s27, %s1080_s28  }
  0x54   :  { %s1085_s23 = smov [#allocation11]   ;;  %s1048_s25 = scalar_lea.hbm %s1313_s9, 1024 }
  0x55   :  { %s91_s1 = sshll.u32 %s1085_s23, 4  ;;  %p1049_p12 = scmp.ne.s32.totalorder %s1313_s9, %s1048_s25  ;;  %s92_s1 = int_to_ptr.vmem [resolvable:$true] %s91_s1 }
  0x56   :  { %p1052_p13 = scmp.lt.u32.totalorder %s1048_s25, %s1313_s9 }
  0x58   :  { %p1054_p0 = pnand %p1052_p13, %p1049_p12 }
  0x5a   :  { %1057 = shalt.err (!%p1054_p0)
}
  0x5b   :  { %s1058_s30 = scalar_lea.vmem %s92_s1, 1024  ;;  %p1063_p2 = scmp.lt.s32.totalorder %s92_s1, %s92_s1 }
  0x5c   :  { %p1059_p1 = scmp.ne.s32.totalorder %s92_s1, %s1058_s30  ;;  %p1064_p3 = scmp.lt.s32.totalorder %s1058_s30, %s1058_s30 }
  0x5e   :  { %p1065_p4 = por %p1064_p3, %p1063_p2 }
  0x60   :  { %p1066_p5 = pnand %p1065_p4, %p1059_p1 }
  0x62   :  { %1069 = shalt.err (!%p1066_p5)
}
  0x63   :  { %97 = dma.hbm_to_vmem [thread:$0]  %s1313_s9, 1024, %s92_s1, [#allocation12], %s1079_s27, %s1079_s27, %s1080_s28  }
  0x64   :  { %1070 = dma.done.wait [#allocation4], 64  }
  0x65   :  { %1071 = vsyncadd [#allocation4], 4294967232 }
  0x66   :  { %1072 = dma.done.wait [#allocation6], 2048  }
  0x67   :  { %1073 = vsyncadd [#allocation6], 4294965248 }
  0x68   :  { %1074 = dma.done.wait [#allocation9], 2048  }
  0x69   :  { %1075 = vsyncadd [#allocation9], 4294965248 }
  0x6a   :  { %1076 = dma.done.wait [#allocation12], 1024  }
  0x6b   :  { %1077 = vsyncadd [#allocation12], 4294966272  ;;  %v1086_v0 = vmov 0.0   ;;  %vm1087_vm0 = vmmov 0   ;;  %v1088_v1 = vmov 0   ;;  %v898_v2 = vld [vmem:[#allocation5] sm:$0xff]  }
  0x6c   :  { %787 = vmatprep.subr.bf16.mxu0 %v1086_v0  ;;  %803 = vmatprep.mubr.msk.bf16.mxu0 %vm1087_vm0, %v1086_v0  ;;  %119 = vst [vmem:[#allocation2] sm:$0xf] %v1088_v1  ;;  %v899_v3 = vld [vmem:[#allocation5 + $0x8] sm:$0xff]   ;;  %v900_v4 = vld [vmem:[#allocation5 + $0x10] sm:$0xff]   ;;  %vm121_vm1 = vcmask 338944   ;;  %v906_v6 = vld [vmem:[#allocation7] sm:$0xff]  }
  0x6d   :  { %807 = vmatprep.subr.bf16.mxu1 %v1086_v0  ;;  %823 = vmatprep.mubr.msk.bf16.mxu1 %vm1087_vm0, %v1086_v0  ;;  %v120_v5 = vld [vmem:[#allocation3] sm:$0xf]  ;;  %v907_v8 = vld [vmem:[#allocation7 + $0x8] sm:$0xff]   ;;  %v902_v9 = vld [vmem:[#allocation5 + $0x20] sm:$0xff]   ;;  %vm687_vm2 = vcmask 23552  }
  0x6e   :  { %788 = vmatpush3.bf16.msra.mxu0 %v898_v2  ;;  %122 = vst.msk [vmem:[#allocation2] sm:$0xf] %vm121_vm1, %v120_v5  ;;  %v901_v7 = vld [vmem:[#allocation5 + $0x18] sm:$0xff]   ;;  %808 = vmatpush3.bf16.msra.mxu1 %v906_v6  ;;  %v908_v10 = vld [vmem:[#allocation7 + $0x10] sm:$0xff]   ;;  %v903_v11 = vld [vmem:[#allocation5 + $0x28] sm:$0xff]  }
  0x6f   :  { %789 = vmatprep.subr.bf16.mxu0 %v1086_v0  ;;  %809 = vmatprep.subr.bf16.mxu1 %v1086_v0  ;;  %v909_v12 = vld [vmem:[#allocation7 + $0x18] sm:$0xff]   ;;  %v904_v13 = vld [vmem:[#allocation5 + $0x30] sm:$0xff]   ;;  %v910_v14 = vld [vmem:[#allocation7 + $0x20] sm:$0xff]  }
  0x70   :  { %v905_v15 = vld [vmem:[#allocation5 + $0x38] sm:$0xff]   ;;  %v911_v16 = vld [vmem:[#allocation7 + $0x28] sm:$0xff]   ;;  %v912_v18 = vld [vmem:[#allocation7 + $0x30] sm:$0xff]  }
  0x71   :  { %v913_v19 = vld [vmem:[#allocation7 + $0x38] sm:$0xff]   ;;  %v914_v20 = vld [vmem:[#allocation8] sm:$0xff]   ;;  %v915_v21 = vld [vmem:[#allocation8 + $0x8] sm:$0xff]  }
  0x72   :  { %790 = vmatpush3.bf16.msra.mxu0 %v899_v3  ;;  %810 = vmatpush3.bf16.msra.mxu1 %v907_v8  ;;  %v916_v22 = vld [vmem:[#allocation8 + $0x10] sm:$0xff]   ;;  %v917_v23 = vld [vmem:[#allocation8 + $0x18] sm:$0xff]   ;;  %v918_v24 = vld [vmem:[#allocation8 + $0x20] sm:$0xff]  }
  0x73   :  { %791 = vmatprep.subr.bf16.mxu0 %v1086_v0  ;;  %811 = vmatprep.subr.bf16.mxu1 %v1086_v0  ;;  %v919_v25 = vld [vmem:[#allocation8 + $0x28] sm:$0xff]   ;;  %v697_v26 = vld [vmem:[%s1306_s2] ss:$0 sm:$0xff]  ;;  %v921_v35 = vld [vmem:[#allocation8 + $0x38] sm:$0xff]  }
  0x74   :  { %v920_v34 = vld [vmem:[#allocation8 + $0x30] sm:$0xff]   ;;  %v922_v36 = vld [vmem:[#allocation10] sm:$0xff]   ;;  %v923_v37 = vld [vmem:[#allocation10 + $0x8] sm:$0xff]  }
  0x75   :  { %v123_v17 = vld [vmem:[#allocation2] sm:$0xf]  ;;  %v924_v38 = vld [vmem:[#allocation10 + $0x10] sm:$0xff]   ;;  %v926_v40 = vld [vmem:[#allocation10 + $0x20] sm:$0xff]  }
  0x76   :  { %792 = vmatpush3.bf16.msra.mxu0 %v900_v4  ;;  %812 = vmatpush3.bf16.msra.mxu1 %v908_v10  ;;  %v925_v39 = vld [vmem:[#allocation10 + $0x18] sm:$0xff]   ;;  %v927_v41 = vld [vmem:[#allocation10 + $0x28] sm:$0xff]   ;;  %v706_v42 = vld [vmem:[%s1308_s4] ss:$0 sm:$0xff] }
  0x77   :  { %793 = vmatprep.subr.bf16.mxu0 %v1086_v0  ;;  %813 = vmatprep.subr.bf16.mxu1 %v1086_v0  ;;  %v928_v50 = vld [vmem:[#allocation10 + $0x30] sm:$0xff]   ;;  %v929_v51 = vld [vmem:[#allocation10 + $0x38] sm:$0xff]   ;;  %v930_v52 = vld [vmem:[#allocation11] sm:$0xff]  }
  0x78   :  { %v931_v53 = vld [vmem:[#allocation11 + $0x8] sm:$0xff]   ;;  %v932_v54 = vld [vmem:[#allocation11 + $0x10] sm:$0xff]   ;;  %v933_v55 = vld [vmem:[#allocation11 + $0x18] sm:$0xff]  }
  0x79   :  { %v934_v56 = vld [vmem:[#allocation11 + $0x20] sm:$0xff]   ;;  %v935_v57 = vld [vmem:[#allocation11 + $0x28] sm:$0xff]   ;;  %v715_v58 = vld [vmem:[%s1310_s6] ss:$0 sm:$0xff] }
  0x7a   :  { %794 = vmatpush3.bf16.msra.mxu0 %v901_v7  ;;  %814 = vmatpush3.bf16.msra.mxu1 %v909_v12  ;;  %v936_v3 = vld [vmem:[#allocation11 + $0x30] sm:$0xff]   ;;  %v937_v4 = vld [vmem:[#allocation11 + $0x38] sm:$0xff]  }
  0x7b   :  { %795 = vmatprep.subr.bf16.mxu0 %v1086_v0  ;;  %815 = vmatprep.subr.bf16.mxu1 %v1086_v0  ;;  %v724_v5 = vld [vmem:[%s1312_s8] ss:$0 sm:$0xff] }
  0x7e   :  { %796 = vmatpush3.bf16.msra.mxu0 %v902_v9  ;;  %816 = vmatpush3.bf16.msra.mxu1 %v910_v14 }
  0x7f   :  { %797 = vmatprep.subr.bf16.mxu0 %v1086_v0  ;;  %817 = vmatprep.subr.bf16.mxu1 %v1086_v0 }
  0x82   :  { %798 = vmatpush3.bf16.msra.mxu0 %v903_v11  ;;  %818 = vmatpush3.bf16.msra.mxu1 %v911_v16 }
  0x83   :  { %799 = vmatprep.subr.bf16.mxu0 %v1086_v0  ;;  %819 = vmatprep.subr.bf16.mxu1 %v1086_v0 }
  0x86   :  { %800 = vmatpush3.bf16.msra.mxu0 %v904_v13  ;;  %820 = vmatpush3.bf16.msra.mxu1 %v912_v18  ;;  %v733_v13 = vld [vmem:[%s1314_s10] ss:$0 sm:$0xff] }
  0x87   :  { %801 = vmatprep.subr.bf16.mxu0 %v1086_v0  ;;  %821 = vmatprep.subr.bf16.mxu1 %v1086_v0 }
  0x8a   :  { %802 = vmatpush3.bf16.msra.mxu0 %v905_v15  ;;  %822 = vmatpush3.bf16.msra.mxu1 %v913_v19 }
  0x8b   :  { %827 = vmatprep.subr.bf16.mxu0 %v1086_v0  ;;  %847 = vmatprep.subr.bf16.mxu1 %v1086_v0 }
  0x8d   :  { %804 = vmatmul.mubr.bf16.vlgmr.msra.gmra.mrb[0].mxu0 %v123_v17 }
  0x8e   :  { %843 = vmatprep.mubr.msk.bf16.mxu0 %vm1087_vm0, %v1086_v0  ;;  %828 = vmatpush3.bf16.msra.mxu0 %v914_v20 }
  0x8f   :  { %829 = vmatprep.subr.bf16.mxu0 %v1086_v0 }
  0x92   :  { %830 = vmatpush3.bf16.msra.mxu0 %v915_v21 }
  0x93   :  { %831 = vmatprep.subr.bf16.mxu0 %v1086_v0 }
  0x96   :  { %832 = vmatpush3.bf16.msra.mxu0 %v916_v22 }
  0x97   :  { %833 = vmatprep.subr.bf16.mxu0 %v1086_v0 }
  0x9a   :  { %834 = vmatpush3.bf16.msra.mxu0 %v917_v23 }
  0x9b   :  { %835 = vmatprep.subr.bf16.mxu0 %v1086_v0 }
  0x9e   :  { %836 = vmatpush3.bf16.msra.mxu0 %v918_v24 }
  0x9f   :  { %837 = vmatprep.subr.bf16.mxu0 %v1086_v0 }
  0xa2   :  { %838 = vmatpush3.bf16.msra.mxu0 %v919_v25 }
  0xa3   :  { %839 = vmatprep.subr.bf16.mxu0 %v1086_v0 }
  0xa6   :  { %840 = vmatpush3.bf16.msra.mxu0 %v920_v34 }
  0xa7   :  { %841 = vmatprep.subr.bf16.mxu0 %v1086_v0 }
  0xaa   :  { %842 = vmatpush3.bf16.msra.mxu0 %v921_v35 }
  0xab   :  { %867 = vmatprep.subr.bf16.mxu0 %v1086_v0 }
 0x160   :  { %v229_v27 = vpop.f32.mrb[0].mxu0 }
 0x161   :  { %v230_v28 = vadd.f32 %v697_v26, %v229_v27  ;;  %v805_v29 = vpop.f32.mrb[1].mxu0 }
 0x162   :  { %v232_v30 = vpop.f32.mrb[2].mxu0 }
 0x163   :  { %v235_v31 = vmax.f32 %v230_v28, 0.0  ;;  %v806_v32 = vpop.f32.mrb[3].mxu0 }
 0x165   :  { %v236_v33 = vpack.c.bf16 %v235_v31, %v235_v31 }
 0x167   :  { %824 = vmatmul.mubr.bf16.vlgmr.msra.gmra.mrb[0].mxu1 %v236_v33 }
 0x168   :  { %863 = vmatprep.mubr.msk.bf16.mxu1 %vm1087_vm0, %v1086_v0  ;;  %848 = vmatpush3.bf16.msra.mxu1 %v922_v36 }
 0x169   :  { %849 = vmatprep.subr.bf16.mxu1 %v1086_v0 }
 0x16c   :  { %850 = vmatpush3.bf16.msra.mxu1 %v923_v37 }
 0x16d   :  { %851 = vmatprep.subr.bf16.mxu1 %v1086_v0 }
 0x170   :  { %852 = vmatpush3.bf16.msra.mxu1 %v924_v38 }
 0x171   :  { %853 = vmatprep.subr.bf16.mxu1 %v1086_v0 }
 0x174   :  { %854 = vmatpush3.bf16.msra.mxu1 %v925_v39 }
 0x175   :  { %855 = vmatprep.subr.bf16.mxu1 %v1086_v0 }
 0x178   :  { %856 = vmatpush3.bf16.msra.mxu1 %v926_v40 }
 0x179   :  { %857 = vmatprep.subr.bf16.mxu1 %v1086_v0 }
 0x17c   :  { %858 = vmatpush3.bf16.msra.mxu1 %v927_v41 }
 0x17d   :  { %859 = vmatprep.subr.bf16.mxu1 %v1086_v0 }
 0x180   :  { %860 = vmatpush3.bf16.msra.mxu1 %v928_v50 }
 0x181   :  { %861 = vmatprep.subr.bf16.mxu1 %v1086_v0 }
 0x184   :  { %862 = vmatpush3.bf16.msra.mxu1 %v929_v51 }
 0x23a   :  { %v342_v43 = vpop.f32.mrb[0].mxu1 }
 0x23b   :  { %v343_v44 = vadd.f32 %v706_v42, %v342_v43  ;;  %v825_v45 = vpop.f32.mrb[1].mxu1 }
 0x23c   :  { %v345_v46 = vpop.f32.mrb[2].mxu1 }
 0x23d   :  { %v348_v47 = vmax.f32 %v343_v44, 0.0  ;;  %v826_v48 = vpop.f32.mrb[3].mxu1 }
 0x23f   :  { %v349_v49 = vpack.c.bf16 %v348_v47, %v348_v47 }
 0x241   :  { %844 = vmatmul.mubr.bf16.vlgmr.msra.gmra.mrb[4].mxu0 %v349_v49 }
 0x242   :  { %883 = vmatprep.mubr.msk.bf16.mxu0 %vm1087_vm0, %v1086_v0  ;;  %868 = vmatpush3.bf16.msra.mxu0 %v930_v52 }
 0x243   :  { %869 = vmatprep.subr.bf16.mxu0 %v1086_v0 }
 0x246   :  { %870 = vmatpush3.bf16.msra.mxu0 %v931_v53 }
 0x247   :  { %871 = vmatprep.subr.bf16.mxu0 %v1086_v0 }
 0x24a   :  { %872 = vmatpush3.bf16.msra.mxu0 %v932_v54 }
 0x24b   :  { %873 = vmatprep.subr.bf16.mxu0 %v1086_v0 }
 0x24e   :  { %874 = vmatpush3.bf16.msra.mxu0 %v933_v55 }
 0x24f   :  { %875 = vmatprep.subr.bf16.mxu0 %v1086_v0 }
 0x252   :  { %876 = vmatpush3.bf16.msra.mxu0 %v934_v56 }
 0x253   :  { %877 = vmatprep.subr.bf16.mxu0 %v1086_v0 }
 0x256   :  { %878 = vmatpush3.bf16.msra.mxu0 %v935_v57 }
 0x257   :  { %879 = vmatprep.subr.bf16.mxu0 %v1086_v0 }
 0x25a   :  { %880 = vmatpush3.bf16.msra.mxu0 %v936_v3 }
 0x25b   :  { %881 = vmatprep.subr.bf16.mxu0 %v1086_v0 }
 0x25e   :  { %882 = vmatpush3.bf16.msra.mxu0 %v937_v4 }
 0x314   :  { %v455_v59 = vpop.f32.mrb[4].mxu0 }
 0x315   :  { %v456_v60 = vadd.f32 %v715_v58, %v455_v59  ;;  %v845_v61 = vpop.f32.mrb[5].mxu0 }
 0x316   :  { %v458_v62 = vpop.f32.mrb[6].mxu0 }
 0x317   :  { %v461_v63 = vmax.f32 %v456_v60, 0.0  ;;  %v846_v1 = vpop.f32.mrb[7].mxu0 }
 0x319   :  { %v462_v2 = vpack.c.bf16 %v461_v63, %v461_v63 }
 0x31b   :  { %864 = vmatmul.mubr.bf16.vlgmr.msra.gmra.mrb[4].mxu1 %v462_v2 }
 0x3ee   :  { %v568_v6 = vpop.f32.mrb[4].mxu1 }
 0x3ef   :  { %v569_v7 = vadd.f32 %v724_v5, %v568_v6  ;;  %v865_v8 = vpop.f32.mrb[5].mxu1 }
 0x3f0   :  { %v571_v9 = vpop.f32.mrb[6].mxu1 }
 0x3f1   :  { %v574_v10 = vmax.f32 %v569_v7, 0.0  ;;  %v866_v11 = vpop.f32.mrb[7].mxu1 }
 0x3f3   :  { %v575_v12 = vpack.c.bf16 %v574_v10, %v574_v10 }
 0x3f5   :  { %884 = vmatmul.mubr.bf16.vlgmr.msra.gmra.mrb[8].mxu0 %v575_v12 }
 0x4c8   :  { %v681_v14 = vpop.f32.mrb[8].mxu0 }
 0x4c9   :  { %v682_v0 = vadd.f32 %v733_v13, %v681_v14  ;;  %v885_v15 = vpop.f32.mrb[9].mxu0 }
 0x4ca   :  { %v684_v16 = vpop.f32.mrb[10].mxu0 }
 0x4cb   :  { %688 = vst.msk [vmem:[%s1315_s11] sm:$0xff] %vm687_vm2, %v682_v0  ;;  %v886_v17 = vpop.f32.mrb[11].mxu0 }
 0x4cc   :  { %693 = vsyncpa [#allocation4], 1 }
 0x4cd   :  { %694 = vsyncpa [#allocation6], 1 }
 0x4ce   :  { %695 = vsyncpa [#allocation9], 1 }
 0x4cf   :  { %696 = vsyncpa [#allocation12], 1 }

</bundles_post_ra>
